<compile_context>
chip_gen: v7x
topology: tpu7x:2x2x1
jax: 0.10.0
libtpu: 0.0.40
codegen_flags: <defaults>
</compile_context>

<pallas_src>
import functools
import math

import jax
import jax.numpy as jnp
import numpy as np
from jax.experimental import pallas as pl
from jax.experimental.pallas import tpu as pltpu


# ----------------------------------------------------------------------------
# In-kernel RoPE helper: flat lane math, no MXU, no reshapes.
# ----------------------------------------------------------------------------
def _rope(x, cos_t, sin_t):
    """rope(x) = x*cos + pair_swap(x)*sin_signed over the lane (last) axis.

    pair_swap maps lane 2i -> x[2i+1] and lane 2i+1 -> x[2i]; the alternating
    (-1, +1) sign of interleaved RoPE is pre-folded into sin_t. Two XLU rolls +
    one VPU select; pairs never cross head boundaries (head_dim is even) so the
    circular wrap lanes are never selected.
    """
    d = x.shape[1]
    lane = jax.lax.broadcasted_iota(jnp.int32, x.shape, dimension=1)
    nbr = jnp.where(
        (lane & 1) == 0,
        pltpu.roll(x, shift=d - 1, axis=1),   # even lane i <- x[i+1]
        pltpu.roll(x, shift=1, axis=1),       # odd  lane i <- x[i-1]
    )
    return x * cos_t + nbr * sin_t


# ----------------------------------------------------------------------------
# Fused Pallas kernel: one grid step == one batch element's full forward.
# ----------------------------------------------------------------------------
def _fused_gmqa_kernel(
    x_ref,      # (S, E)              f32   (batch dim squeezed by BlockSpec)
    wqkv_ref,   # (E + 2*kv_dim, E)   bf16  PyTorch (out, in) layout
    wout_ref,   # (E, E)              bf16  PyTorch (out, in) layout
    mask_ref,   # (S, S)              int8  (0 => masked)
    cos_ref,    # (S, hd)             f32
    sin_ref,    # (S, hd)             f32   (alternating sign folded in)
    o_ref,      # (S, E)
    *,
    num_heads,
    num_kv_heads,
    head_dim,
    scale,
):
    E = num_heads * head_dim
    kv_dim = num_kv_heads * head_dim
    group = num_heads // num_kv_heads
    S = x_ref.shape[0]

    # ---- fused QKV projection: bf16 operands, f32 accumulate on the MXU ----
    x_bf = x_ref[...].astype(jnp.bfloat16)
    qkv = jax.lax.dot_general(
        x_bf, wqkv_ref[...], (((1,), (1,)), ((), ())),
        preferred_element_type=jnp.float32)                       # (S, E + 2*kv_dim)

    q = qkv[:, :E]
    k = qkv[:, E:E + kv_dim]
    v = qkv[:, E + kv_dim:]

    # ---- RoPE (hoisted, once per q/k) -------------------------------------
    cos_hd = cos_ref[...]
    sin_hd = sin_ref[...]
    cos_q = jnp.concatenate([cos_hd] * num_heads, axis=1)         # (S, E)
    sin_q = jnp.concatenate([sin_hd] * num_heads, axis=1)
    cos_k = jnp.concatenate([cos_hd] * num_kv_heads, axis=1)      # (S, kv_dim)
    sin_k = jnp.concatenate([sin_hd] * num_kv_heads, axis=1)

    q = _rope(q, cos_q, sin_q)
    k = _rope(k, cos_k, sin_k)

    # ---- additive mask, computed once and hoisted out of the head loop ----
    # mask==1 -> 0.0 ; mask==0 -> -1e30 (NaN-safe deviation from -inf for
    # fully-masked rows; identical softmax for 0/1 causal masks).
    mask_add = (mask_ref[...].astype(jnp.float32) - 1.0) * 1e30   # (S, S)
    mask_add_g = jnp.concatenate([mask_add] * group, axis=0)      # (group*S, S)

    # bf16 casts for the attention matmul operands (done once, hoisted).
    q_bf = (q * scale).astype(jnp.bfloat16)                       # scale folded into q
    k_bf = k.astype(jnp.bfloat16)
    v_bf = v.astype(jnp.bfloat16)

    # ---- GQA attention, batched per KV group ------------------------------
    # The `group` query heads of each KV head are stacked along sublanes so the
    # score and PV products are two well-shaped matmuls per KV head.
    # TODO(synk): switch to lax.fori_loop + VMEM scratch for production head counts.
    outs = [None] * num_heads
    for g in range(num_kv_heads):
        h0 = g * group
        q_g = jnp.concatenate(
            [q_bf[:, (h0 + j) * head_dim:(h0 + j + 1) * head_dim]
             for j in range(group)],
            axis=0)                                               # (group*S, hd)
        k_g = k_bf[:, g * head_dim:(g + 1) * head_dim]            # (S, hd)
        v_g = v_bf[:, g * head_dim:(g + 1) * head_dim]            # (S, hd)

        s = jax.lax.dot_general(
            q_g, k_g, (((1,), (1,)), ((), ())),
            preferred_element_type=jnp.float32)                   # (group*S, S)
        s = s + mask_add_g

        m = jnp.max(s, axis=-1, keepdims=True)
        e = jnp.exp(s - m)
        denom = jnp.sum(e, axis=-1, keepdims=True)
        p = e * pl.reciprocal(denom, approx=True)                 # EUP reciprocal

        o_g = jnp.dot(p.astype(jnp.bfloat16), v_g,
                      preferred_element_type=jnp.float32)         # (group*S, hd)
        for j in range(group):
            outs[h0 + j] = o_g[j * S:(j + 1) * S, :]              # (S, hd)

    # ---- lane-dense (S, E) slab + ONE output-projection matmul ------------
    o_slab = jnp.concatenate(outs, axis=1)                        # (S, E), head order
    proj = jax.lax.dot_general(
        o_slab.astype(jnp.bfloat16), wout_ref[...],
        (((1,), (1,)), ((), ())),
        preferred_element_type=jnp.float32)                       # (S, E)

    o_ref[...] = proj.astype(o_ref.dtype)


# ----------------------------------------------------------------------------
# Wrapper
# ----------------------------------------------------------------------------
def gmqa_forward(x, attention_mask, freqs_cis, w_qkv, w_out, num_heads, num_kv_heads):
    bs, seq, E = x.shape
    hd = E // num_heads
    kv_dim = num_kv_heads * hd
    qkv_out = E + 2 * kv_dim
    assert hd * num_heads == E and num_heads % num_kv_heads == 0

    # bf16 weights: MXU-native dtype, halves resident VMEM and HBM->VMEM DMA.
    w_qkv_bf = w_qkv.astype(jnp.bfloat16)
    w_out_bf = w_out.astype(jnp.bfloat16)

    # RoPE tables at (S, hd): cos duplicated per pair; sin carries the interleaved
    # (-1, +1) sign so the kernel only needs mul/add (no dense rotation matrix).
    cos_hd = jnp.repeat(freqs_cis[..., 0], 2, axis=-1).astype(jnp.float32)     # (S, hd)
    alt = jnp.tile(jnp.array([-1.0, 1.0], jnp.float32), hd // 2)               # (hd,)
    sin_hd = (jnp.repeat(freqs_cis[..., 1], 2, axis=-1) * alt).astype(jnp.float32)

    # Mask as int8 (0 => masked). Leading dims are assumed to be broadcast dims.
    mask2d = attention_mask.reshape((-1,) + attention_mask.shape[-2:])[0]
    mask_i8 = (mask2d != 0).astype(jnp.int8)

    kernel = functools.partial(
        _fused_gmqa_kernel,
        num_heads=num_heads,
        num_kv_heads=num_kv_heads,
        head_dim=hd,
        scale=1.0 / math.sqrt(hd),
    )

    return pl.pallas_call(
        kernel,
        out_shape=jax.ShapeDtypeStruct((bs, seq, E), x.dtype),
        grid=(bs,),
        in_specs=[
            pl.BlockSpec((None, seq, E), lambda b: (b, 0, 0)),     # x   (per-batch)
            pl.BlockSpec((qkv_out, E), lambda b: (0, 0)),          # w_qkv (resident)
            pl.BlockSpec((E, E), lambda b: (0, 0)),                # w_out (resident)
            pl.BlockSpec((seq, seq), lambda b: (0, 0)),            # mask  (resident)
            pl.BlockSpec((seq, hd), lambda b: (0, 0)),             # cos   (S, hd)
            pl.BlockSpec((seq, hd), lambda b: (0, 0)),             # sin   (S, hd)
        ],
        out_specs=pl.BlockSpec((None, seq, E), lambda b: (b, 0, 0)),
        compiler_params=pltpu.CompilerParams(
            dimension_semantics=("parallel",),     # megacore: batches across TCs
            vmem_limit_bytes=32 * 1024 * 1024),    # explicit, with headroom
    )(x, w_qkv_bf, w_out_bf, mask_i8, cos_hd, sin_hd)


# ----------------------------------------------------------------------------
# Pure-jnp reference (mirrors the PyTorch module) for correctness check.
# ----------------------------------------------------------------------------
def apply_rotary_embed(x, freqs_cis):
    """x: (bs, seq, n_heads, head_dim), freqs_cis: (seq, head_dim//2, 2)."""
    xs = x.astype(jnp.float32).reshape(*x.shape[:-1], -1, 2)
    fc = freqs_cis.reshape(1, xs.shape[1], 1, xs.shape[3], 2)
    out = jnp.stack(
        [
            xs[..., 0] * fc[..., 0] - xs[..., 1] * fc[..., 1],
            xs[..., 1] * fc[..., 0] + xs[..., 0] * fc[..., 1],
        ],
        axis=-1,
    )
    return out.reshape(x.shape).astype(x.dtype)


def gmqa_reference(x, attention_mask, freqs_cis, w_qkv, w_out, num_heads, num_kv_heads):
    bs, seq, E = x.shape
    hd = E // num_heads
    kv_dim = num_kv_heads * hd
    group = num_heads // num_kv_heads
    qkv = x @ w_qkv.T
    q, k, v = jnp.split(qkv, [E, E + kv_dim], axis=-1)
    q = apply_rotary_embed(q.reshape(bs, seq, num_heads, hd), freqs_cis)
    k = apply_rotary_embed(k.reshape(bs, seq, num_kv_heads, hd), freqs_cis)
    v = v.reshape(bs, seq, num_kv_heads, hd)
    q, k, v = (t.transpose(0, 2, 1, 3) for t in (q, k, v))
    k = jnp.repeat(k, group, axis=1)
    v = jnp.repeat(v, group, axis=1)
    s = (q @ k.transpose(0, 1, 3, 2)) / math.sqrt(hd)
    s = jnp.where(attention_mask == 0, -jnp.inf, s)
    p = jax.nn.softmax(s, axis=-1)
    o = (p @ v).transpose(0, 2, 1, 3).reshape(bs, seq, E)
    return o @ w_out.T


# ----------------------------------------------------------------------------
if __name__ == "__main__":
    # Config consistent with the module: embedding_dim=32, num_heads=4,
    # head_dim=8, num_kv_heads=2 (grouped MQA), batch=2, seq=8.
    bs, seq, E = 2, 8, 32
    num_heads, num_kv_heads = 4, 2
    hd = E // num_heads
    kv_dim = num_kv_heads * hd

    key = jax.random.PRNGKey(0)
    k0, k1, k2 = jax.random.split(key, 3)

    x = jax.random.normal(k0, (bs, seq, E), dtype=jnp.float32)
    w_qkv = jax.random.normal(k1, (E + 2 * kv_dim, E), dtype=jnp.float32) * 0.05
    w_out = jax.random.normal(k2, (E, E), dtype=jnp.float32) * 0.05

    # Causal attention mask, shape (1, 1, seq, seq); 0 means masked.
    attention_mask = jnp.tril(jnp.ones((seq, seq), dtype=jnp.float32))[None, None]

    # RoPE frequencies, shape (seq, head_dim//2, 2) = (cos, sin).
    theta = 10000.0
    inv_freq = 1.0 / (theta ** (jnp.arange(0, hd, 2, dtype=jnp.float32) / hd))
    angles = jnp.arange(seq, dtype=jnp.float32)[:, None] * inv_freq[None, :]
    freqs_cis = jnp.stack([jnp.cos(angles), jnp.sin(angles)], axis=-1)

    out = gmqa_forward(x, attention_mask, freqs_cis, w_qkv, w_out,
                       num_heads, num_kv_heads)
    out = jax.block_until_ready(out)

    ref = gmqa_reference(x, attention_mask, freqs_cis, w_qkv, w_out,
                         num_heads, num_kv_heads)
    # bf16 matmul operands + approx reciprocal => loose tolerance vs f32 reference.
    np.testing.assert_allclose(np.asarray(out), np.asarray(ref), rtol=2e-2, atol=2e-2)

    print("KERNEL_OK")
</pallas_src>

<mosaic_0001>
module attributes {stable_mosaic.version = 11 : i64} {
  func.func @_fused_gmqa_kernel(%arg0: i32, %arg1: memref<1x8x32xf32, #tpu.memory_space<vmem>>, %arg2: memref<64x32xbf16, #tpu.memory_space<vmem>>, %arg3: memref<32x32xbf16, #tpu.memory_space<vmem>>, %arg4: memref<8x8xi8, #tpu.memory_space<vmem>>, %arg5: memref<8x8xf32, #tpu.memory_space<vmem>>, %arg6: memref<8x8xf32, #tpu.memory_space<vmem>>, %arg7: memref<1x8x32xf32, #tpu.memory_space<vmem>>) attributes {dimension_semantics = [#tpu.dimension_semantics<parallel>], iteration_bounds = array<i64: 2>, scalar_prefetch = 0 : i64, scratch_operands = 0 : i64, tpu.core_type = #tpu.core_type<tc>, window_params = [{transform_indices = @transform_0, window_bounds = array<i64: 1, 8, 32>}, {pipeline_mode = #tpu.pipeline_mode<synchronous>, transform_indices = @transform_1, window_bounds = array<i64: 64, 32>}, {pipeline_mode = #tpu.pipeline_mode<synchronous>, transform_indices = @transform_2, window_bounds = array<i64: 32, 32>}, {pipeline_mode = #tpu.pipeline_mode<synchronous>, transform_indices = @transform_3, window_bounds = array<i64: 8, 8>}, {pipeline_mode = #tpu.pipeline_mode<synchronous>, transform_indices = @transform_4, window_bounds = array<i64: 8, 8>}, {pipeline_mode = #tpu.pipeline_mode<synchronous>, transform_indices = @transform_5, window_bounds = array<i64: 8, 8>}, {transform_indices = @transform_6, window_bounds = array<i64: 1, 8, 32>}]} {
    %c0 = arith.constant 0 : index
    %c0_0 = arith.constant 0 : index
    %c0_1 = arith.constant 0 : index
    %0 = vector.load %arg1[%c0, %c0_0, %c0_1] : memref<1x8x32xf32, #tpu.memory_space<vmem>>, vector<1x8x32xf32>
    %1 = vector.shape_cast %0 : vector<1x8x32xf32> to vector<8x32xf32>
    %2 = arith.truncf %1 : vector<8x32xf32> to vector<8x32xbf16>
    %c0_2 = arith.constant 0 : index
    %c0_3 = arith.constant 0 : index
    %3 = vector.load %arg2[%c0_2, %c0_3] : memref<64x32xbf16, #tpu.memory_space<vmem>>, vector<64x32xbf16>
    %cst = arith.constant dense<0.000000e+00> : vector<8x64xf32>
    %4 = tpu.matmul %2, %3, %cst {dimension_numbers = #tpu.dot_dimension_numbers<[1], [1], [0], [0], [0, 0, 1, 0], [], []>} : vector<8x32xbf16>, vector<64x32xbf16>, vector<8x64xf32> -> vector<8x64xf32>
    %5 = vector.extract_strided_slice %4 {offsets = [0, 0], sizes = [8, 32], strides = [1, 1]} : vector<8x64xf32> to vector<8x32xf32>
    %6 = vector.extract_strided_slice %4 {offsets = [0, 32], sizes = [8, 16], strides = [1, 1]} : vector<8x64xf32> to vector<8x16xf32>
    %7 = vector.extract_strided_slice %4 {offsets = [0, 48], sizes = [8, 16], strides = [1, 1]} : vector<8x64xf32> to vector<8x16xf32>
    %c0_4 = arith.constant 0 : index
    %c0_5 = arith.constant 0 : index
    %8 = vector.load %arg5[%c0_4, %c0_5] : memref<8x8xf32, #tpu.memory_space<vmem>>, vector<8x8xf32>
    %c0_6 = arith.constant 0 : index
    %c0_7 = arith.constant 0 : index
    %9 = vector.load %arg6[%c0_6, %c0_7] : memref<8x8xf32, #tpu.memory_space<vmem>>, vector<8x8xf32>
    %10 = tpu.concatenate %8, %8, %8, %8 in 1 : vector<8x8xf32>, vector<8x8xf32>, vector<8x8xf32>, vector<8x8xf32> -> vector<8x32xf32>
    %11 = tpu.concatenate %9, %9, %9, %9 in 1 : vector<8x8xf32>, vector<8x8xf32>, vector<8x8xf32>, vector<8x8xf32> -> vector<8x32xf32>
    %12 = tpu.concatenate %8, %8 in 1 : vector<8x8xf32>, vector<8x8xf32> -> vector<8x16xf32>
    %13 = tpu.concatenate %9, %9 in 1 : vector<8x8xf32>, vector<8x8xf32> -> vector<8x16xf32>
    %14 = tpu.iota {dimensions = array<i32: 1>} : vector<8x32xi32>
    %c1_i32 = arith.constant 1 : i32
    %15 = vector.broadcast %c1_i32 : i32 to vector<8x32xi32>
    %16 = arith.andi %14, %15 : vector<8x32xi32>
    %c0_i32 = arith.constant 0 : i32
    %17 = vector.broadcast %c0_i32 : i32 to vector<8x32xi32>
    %18 = arith.cmpi eq, %16, %17 : vector<8x32xi32>
    %c31_i32 = arith.constant 31 : i32
    %19 = tpu.dynamic_rotate %5 by %c31_i32 dim 1 : vector<8x32xf32>, i32 -> vector<8x32xf32>
    %c1_i32_8 = arith.constant 1 : i32
    %20 = tpu.dynamic_rotate %5 by %c1_i32_8 dim 1 : vector<8x32xf32>, i32 -> vector<8x32xf32>
    %21 = arith.select %18, %19, %20 : vector<8x32xi1>, vector<8x32xf32>
    %22 = arith.mulf %5, %10 : vector<8x32xf32>
    %23 = arith.mulf %21, %11 : vector<8x32xf32>
    %24 = arith.addf %22, %23 : vector<8x32xf32>
    %25 = tpu.iota {dimensions = array<i32: 1>} : vector<8x16xi32>
    %c1_i32_9 = arith.constant 1 : i32
    %26 = vector.broadcast %c1_i32_9 : i32 to vector<8x16xi32>
    %27 = arith.andi %25, %26 : vector<8x16xi32>
    %c0_i32_10 = arith.constant 0 : i32
    %28 = vector.broadcast %c0_i32_10 : i32 to vector<8x16xi32>
    %29 = arith.cmpi eq, %27, %28 : vector<8x16xi32>
    %c15_i32 = arith.constant 15 : i32
    %30 = tpu.dynamic_rotate %6 by %c15_i32 dim 1 : vector<8x16xf32>, i32 -> vector<8x16xf32>
    %c1_i32_11 = arith.constant 1 : i32
    %31 = tpu.dynamic_rotate %6 by %c1_i32_11 dim 1 : vector<8x16xf32>, i32 -> vector<8x16xf32>
    %32 = arith.select %29, %30, %31 : vector<8x16xi1>, vector<8x16xf32>
    %33 = arith.mulf %6, %12 : vector<8x16xf32>
    %34 = arith.mulf %32, %13 : vector<8x16xf32>
    %35 = arith.addf %33, %34 : vector<8x16xf32>
    %c0_12 = arith.constant 0 : index
    %c0_13 = arith.constant 0 : index
    %36 = vector.load %arg4[%c0_12, %c0_13] : memref<8x8xi8, #tpu.memory_space<vmem>>, vector<8x8xi8>
    %37 = arith.sitofp %36 : vector<8x8xi8> to vector<8x8xf32>
    %cst_14 = arith.constant 1.000000e+00 : f32
    %38 = vector.broadcast %cst_14 : f32 to vector<8x8xf32>
    %39 = arith.subf %37, %38 : vector<8x8xf32>
    %cst_15 = arith.constant 1.000000e+30 : f32
    %40 = vector.broadcast %cst_15 : f32 to vector<8x8xf32>
    %41 = arith.mulf %39, %40 : vector<8x8xf32>
    %42 = tpu.concatenate %41, %41 in 0 : vector<8x8xf32>, vector<8x8xf32> -> vector<16x8xf32>
    %cst_16 = arith.constant 0.353553385 : f32
    %43 = vector.broadcast %cst_16 : f32 to vector<8x32xf32>
    %44 = arith.mulf %24, %43 : vector<8x32xf32>
    %45 = arith.truncf %44 : vector<8x32xf32> to vector<8x32xbf16>
    %46 = arith.truncf %35 : vector<8x16xf32> to vector<8x16xbf16>
    %47 = arith.truncf %7 : vector<8x16xf32> to vector<8x16xbf16>
    %48 = vector.extract_strided_slice %45 {offsets = [0, 0], sizes = [8, 8], strides = [1, 1]} : vector<8x32xbf16> to vector<8x8xbf16>
    %49 = vector.extract_strided_slice %45 {offsets = [0, 8], sizes = [8, 8], strides = [1, 1]} : vector<8x32xbf16> to vector<8x8xbf16>
    %50 = tpu.concatenate %48, %49 in 0 : vector<8x8xbf16>, vector<8x8xbf16> -> vector<16x8xbf16>
    %51 = vector.extract_strided_slice %46 {offsets = [0, 0], sizes = [8, 8], strides = [1, 1]} : vector<8x16xbf16> to vector<8x8xbf16>
    %52 = vector.extract_strided_slice %47 {offsets = [0, 0], sizes = [8, 8], strides = [1, 1]} : vector<8x16xbf16> to vector<8x8xbf16>
    %cst_17 = arith.constant dense<0.000000e+00> : vector<16x8xf32>
    %53 = tpu.matmul %50, %51, %cst_17 {dimension_numbers = #tpu.dot_dimension_numbers<[1], [1], [0], [0], [0, 0, 1, 0], [], []>} : vector<16x8xbf16>, vector<8x8xbf16>, vector<16x8xf32> -> vector<16x8xf32>
    %54 = arith.addf %53, %42 : vector<16x8xf32>
    %cst_18 = arith.constant dense<0xFF800000> : vector<16xf32>
    %55 = vector.multi_reduction <maximumf>, %54, %cst_18 [1] : vector<16x8xf32> to vector<16xf32>
    %56 = vector.shape_cast %55 : vector<16xf32> to vector<16x1xf32>
    %57 = vector.broadcast %56 : vector<16x1xf32> to vector<16x8xf32>
    %58 = arith.subf %54, %57 : vector<16x8xf32>
    %59 = math.exp %58 : vector<16x8xf32>
    %cst_19 = arith.constant dense<0.000000e+00> : vector<16xf32>
    %60 = vector.multi_reduction <add>, %59, %cst_19 [1] : vector<16x8xf32> to vector<16xf32>
    %61 = vector.shape_cast %60 : vector<16xf32> to vector<16x1xf32>
    %62 = tpu.reciprocal %61 {approx = true} : vector<16x1xf32> -> vector<16x1xf32>
    %63 = vector.broadcast %62 : vector<16x1xf32> to vector<16x8xf32>
    %64 = arith.mulf %59, %63 : vector<16x8xf32>
    %65 = arith.truncf %64 : vector<16x8xf32> to vector<16x8xbf16>
    %cst_20 = arith.constant dense<0.000000e+00> : vector<16x8xf32>
    %66 = tpu.matmul %65, %52, %cst_20 {dimension_numbers = #tpu.dot_dimension_numbers<[1], [0], [0], [1], [0, 0, 1, 1], [], []>} : vector<16x8xbf16>, vector<8x8xbf16>, vector<16x8xf32> -> vector<16x8xf32>
    %67 = vector.extract_strided_slice %66 {offsets = [0, 0], sizes = [8, 8], strides = [1, 1]} : vector<16x8xf32> to vector<8x8xf32>
    %68 = vector.extract_strided_slice %66 {offsets = [8, 0], sizes = [8, 8], strides = [1, 1]} : vector<16x8xf32> to vector<8x8xf32>
    %69 = vector.extract_strided_slice %45 {offsets = [0, 16], sizes = [8, 8], strides = [1, 1]} : vector<8x32xbf16> to vector<8x8xbf16>
    %70 = vector.extract_strided_slice %45 {offsets = [0, 24], sizes = [8, 8], strides = [1, 1]} : vector<8x32xbf16> to vector<8x8xbf16>
    %71 = tpu.concatenate %69, %70 in 0 : vector<8x8xbf16>, vector<8x8xbf16> -> vector<16x8xbf16>
    %72 = vector.extract_strided_slice %46 {offsets = [0, 8], sizes = [8, 8], strides = [1, 1]} : vector<8x16xbf16> to vector<8x8xbf16>
    %73 = vector.extract_strided_slice %47 {offsets = [0, 8], sizes = [8, 8], strides = [1, 1]} : vector<8x16xbf16> to vector<8x8xbf16>
    %cst_21 = arith.constant dense<0.000000e+00> : vector<16x8xf32>
    %74 = tpu.matmul %71, %72, %cst_21 {dimension_numbers = #tpu.dot_dimension_numbers<[1], [1], [0], [0], [0, 0, 1, 0], [], []>} : vector<16x8xbf16>, vector<8x8xbf16>, vector<16x8xf32> -> vector<16x8xf32>
    %75 = arith.addf %74, %42 : vector<16x8xf32>
    %cst_22 = arith.constant dense<0xFF800000> : vector<16xf32>
    %76 = vector.multi_reduction <maximumf>, %75, %cst_22 [1] : vector<16x8xf32> to vector<16xf32>
    %77 = vector.shape_cast %76 : vector<16xf32> to vector<16x1xf32>
    %78 = vector.broadcast %77 : vector<16x1xf32> to vector<16x8xf32>
    %79 = arith.subf %75, %78 : vector<16x8xf32>
    %80 = math.exp %79 : vector<16x8xf32>
    %cst_23 = arith.constant dense<0.000000e+00> : vector<16xf32>
    %81 = vector.multi_reduction <add>, %80, %cst_23 [1] : vector<16x8xf32> to vector<16xf32>
    %82 = vector.shape_cast %81 : vector<16xf32> to vector<16x1xf32>
    %83 = tpu.reciprocal %82 {approx = true} : vector<16x1xf32> -> vector<16x1xf32>
    %84 = vector.broadcast %83 : vector<16x1xf32> to vector<16x8xf32>
    %85 = arith.mulf %80, %84 : vector<16x8xf32>
    %86 = arith.truncf %85 : vector<16x8xf32> to vector<16x8xbf16>
    %cst_24 = arith.constant dense<0.000000e+00> : vector<16x8xf32>
    %87 = tpu.matmul %86, %73, %cst_24 {dimension_numbers = #tpu.dot_dimension_numbers<[1], [0], [0], [1], [0, 0, 1, 1], [], []>} : vector<16x8xbf16>, vector<8x8xbf16>, vector<16x8xf32> -> vector<16x8xf32>
    %88 = vector.extract_strided_slice %87 {offsets = [0, 0], sizes = [8, 8], strides = [1, 1]} : vector<16x8xf32> to vector<8x8xf32>
    %89 = vector.extract_strided_slice %87 {offsets = [8, 0], sizes = [8, 8], strides = [1, 1]} : vector<16x8xf32> to vector<8x8xf32>
    %90 = tpu.concatenate %67, %68, %88, %89 in 1 : vector<8x8xf32>, vector<8x8xf32>, vector<8x8xf32>, vector<8x8xf32> -> vector<8x32xf32>
    %91 = arith.truncf %90 : vector<8x32xf32> to vector<8x32xbf16>
    %c0_25 = arith.constant 0 : index
    %c0_26 = arith.constant 0 : index
    %92 = vector.load %arg3[%c0_25, %c0_26] : memref<32x32xbf16, #tpu.memory_space<vmem>>, vector<32x32xbf16>
    %cst_27 = arith.constant dense<0.000000e+00> : vector<8x32xf32>
    %93 = tpu.matmul %91, %92, %cst_27 {dimension_numbers = #tpu.dot_dimension_numbers<[1], [1], [0], [0], [0, 0, 1, 0], [], []>} : vector<8x32xbf16>, vector<32x32xbf16>, vector<8x32xf32> -> vector<8x32xf32>
    %c0_28 = arith.constant 0 : index
    %c0_29 = arith.constant 0 : index
    %c0_30 = arith.constant 0 : index
    %94 = vector.load %arg7[%c0_28, %c0_29, %c0_30] : memref<1x8x32xf32, #tpu.memory_space<vmem>>, vector<1x8x32xf32>
    %95 = vector.shape_cast %94 : vector<1x8x32xf32> to vector<8x32xf32>
    %96 = vector.shape_cast %93 : vector<8x32xf32> to vector<1x8x32xf32>
    tpu.vector_store %arg7[%c0_28, %c0_29, %c0_30], %96 {strides = array<i32>} : memref<1x8x32xf32, #tpu.memory_space<vmem>>, vector<1x8x32xf32>,
    return
  }
  func.func @transform_0(%arg0: i32) -> (i32, i32, i32) {
    %c0_i32 = arith.constant 0 : i32
    %c0_i32_0 = arith.constant 0 : i32
    %c0_i32_1 = arith.constant 0 : i32
    return %arg0, %c0_i32, %c0_i32_0 : i32, i32, i32
  }
  func.func @transform_1(%arg0: i32) -> (i32, i32) {
    %c0_i32 = arith.constant 0 : i32
    %c0_i32_0 = arith.constant 0 : i32
    %c0_i32_1 = arith.constant 0 : i32
    return %c0_i32, %c0_i32_0 : i32, i32
  }
  func.func @transform_2(%arg0: i32) -> (i32, i32) {
    %c0_i32 = arith.constant 0 : i32
    %c0_i32_0 = arith.constant 0 : i32
    %c0_i32_1 = arith.constant 0 : i32
    return %c0_i32, %c0_i32_0 : i32, i32
  }
  func.func @transform_3(%arg0: i32) -> (i32, i32) {
    %c0_i32 = arith.constant 0 : i32
    %c0_i32_0 = arith.constant 0 : i32
    %c0_i32_1 = arith.constant 0 : i32
    return %c0_i32, %c0_i32_0 : i32, i32
  }
  func.func @transform_4(%arg0: i32) -> (i32, i32) {
    %c0_i32 = arith.constant 0 : i32
    %c0_i32_0 = arith.constant 0 : i32
    %c0_i32_1 = arith.constant 0 : i32
    return %c0_i32, %c0_i32_0 : i32, i32
  }
  func.func @transform_5(%arg0: i32) -> (i32, i32) {
    %c0_i32 = arith.constant 0 : i32
    %c0_i32_0 = arith.constant 0 : i32
    %c0_i32_1 = arith.constant 0 : i32
    return %c0_i32, %c0_i32_0 : i32, i32
  }
  func.func @transform_6(%arg0: i32) -> (i32, i32, i32) {
    %c0_i32 = arith.constant 0 : i32
    %c0_i32_0 = arith.constant 0 : i32
    %c0_i32_1 = arith.constant 0 : i32
    return %arg0, %c0_i32, %c0_i32_0 : i32, i32, i32
  }
}

</mosaic_0001>

<bundles_post_ra>
// kernel: tpu_custom_call.1
= control target key start
LH: loop header
LB: loop body
LE: loop exit
PB: predicated region body
PF: predicated region fallthrough
CT: control target
= control target key end

     0   :  { %11 = vsyncpa [#allocation3], 0  ;;  %s1328_s0 = inlined_call_operand.vmem [shape: f32[2,8,32], index: 0, kind: input, shape index: {}]   ;;  %s1329_s1 = inlined_call_operand.vmem [shape: bf16[64,32], index: 1, kind: input, shape index: {}]   ;;  %s1330_s2 = inlined_call_operand.vmem [shape: bf16[32,32], index: 2, kind: input, shape index: {}]   ;;  %s1331_s3 = inlined_call_operand.vmem [shape: s8[8,8], index: 3, kind: input, shape index: {}]   ;;  %s1332_s4 = inlined_call_operand.vmem [shape: f32[8,8], index: 4, kind: input, shape index: {}]   ;;  %s1333_s5 = inlined_call_operand.vmem [shape: f32[8,8], index: 5, kind: input, shape index: {}]   ;;  %s1334_s6 = inlined_call_operand.hbm [shape: f32[2,8,32], index: 6, kind: output, shape index: {}]  }
   0x1   :  { %13 = vsyncpa [#allocation3 + $0x1], 0  ;;  %s1107_s21 = smov 0   ;;  %s1109_s22 = smov 0  }
   0x2   :  { %s1111_s23 = smov 0   ;;  %s1113_s24 = smov 0  }
   0x3 LB: > { %s1128_s25 = sadd.s32 4294967295, %s1054_s24   ;;  %s833_s26 = sadd.s32 4294967294, %s1054_s24   ;;  %s1054_s24 = sphi %s1113_s24, %s1342_s24   ;;  %s1050_s23 = sphi %s1111_s23, %s1341_s23   ;;  %s1046_s22 = sphi %s1109_s22, %s1340_s22   ;;  %s1042_s21 = sphi %s1107_s21, %s1339_s21  }
   0x4   : > { %s1132_s27 = sadd.s32 1, %s1054_s24   ;;  %s157_s28 = sadd.s32 1, %s1050_s23 }
   0x5   : > { %s154_s29 = ssub.s32 %s1054_s24, %s1132_s27  ;;  %p167_p0 = scmp.ne.s32.totalorder %s1050_s23, %s1046_s22 }
   0x6   : > { %p155_p1 = scmp.eq.s32.totalorder %s154_s29, 0  ;;  %p168_p2 = scmp.eq.s32.totalorder %s1128_s25, 1 }
   0x7   : > { %p173_p3 = scmp.ne.s32.totalorder %s1046_s22, %s1042_s21  ;;  %p174_p4 = scmp.eq.s32.totalorder %s833_s26, 1 }
   0x8   : > { %s1143_s30 = scalar_select %p155_p1, %s1050_s23, %s157_s28  }
   0x9   : > { %p1145_p5 = por %p168_p2, %p167_p0  ;;  %p1149_p6 = por %p174_p4, %p173_p3 }
   0xa   : > { %p836_p7 = scmp.ge.s32.totalorder %s1054_s24, 1  ;;  %p214_p8 = scmp.lt.s32.totalorder %s1054_s24, 3 }
   0xc   : > { %p215_p9 = pnand %p836_p7, %p214_p8 }
   0xd   : > { %v970_v0 = vld [vmem:[%s1329_s1] sm:$0xff] (!%p215_p9)   ;;  %v1056_v1 = vmov (!%p215_p9), 0.0   ;;  %vm278_vm0 = vcmask (!%p215_p9), 261120   ;;  %v971_v3 = vld [vmem:[%s1329_s1 + $0x8] sm:$0xff] (!%p215_p9)   ;;  %vm1057_vm1 = vmmov (!%p215_p9), 0   ;;  %v972_v5 = vld [vmem:[%s1329_s1 + $0x10] sm:$0xff] (!%p215_p9)   ;;  %v365_v26 = vlaneseq (!%p215_p9) }
   0xe   : > { %218 = sbr.rel (%p215_p9) target bundleno = 2606 (0xa2e), region = 44  ;;  %872 = vmatprep.subr.bf16.mxu0 (!%p215_p9), %v1056_v1  ;;  %884 = vmatprep.subr.bf16.mxu1 (!%p215_p9), %v1056_v1  ;;  %v283_v2 = vsel (!%p215_p9), %vm278_vm0, %v970_v0, 0  ;;  %v286_v4 = vsel (!%p215_p9), %vm278_vm0, %v971_v3, 0  ;;  %p243_p10 = scmp.lt.s32.totalorder (!%p215_p9), %s1128_s25, 1  ;;  %v289_v6 = vsel (!%p215_p9), %vm278_vm0, %v972_v5, 0  ;;  %v973_v7 = vld [vmem:[%s1329_s1 + $0x18] sm:$0xff] (!%p215_p9)  }
   0xf   : > { %873 = vmatpush3.bf16.xpose.msra.mxu0 (!%p215_p9), %v283_v2  ;;  %880 = vmatprep.mubr.msk.bf16.mxu0 (!%p215_p9), %vm1057_vm1, %v1056_v1  ;;  %v292_v8 = vsel (!%p215_p9), %vm278_vm0, %v973_v7, 0  ;;  %s1058_s28 = smov (!%p215_p9), 96   ;;  %s1059_s29 = smov (!%p215_p9), 16   ;;  %v334_v16 = vld [vmem:[%s1332_s4] sm:$0xff] (!%p215_p9)  ;;  %vm391_vm2 = vcmask (!%p215_p9), 1047680   ;;  %vm346_vm3 = vcmask (!%p215_p9), 64512  }
  0x10   : > { %874 = vmatprep.subr.bf16.mxu0 (!%p215_p9), %v1056_v1  ;;  %886 = vmatprep.mubr.msk.bf16.mxu1 (!%p215_p9), %vm1057_vm1, %v1056_v1  ;;  %s1060_s11 = smov (!%p215_p9), 8   ;;  %s1061_s12 = smov (!%p215_p9), 32   ;;  %v335_v19 = vld [vmem:[%s1333_s5] sm:$0xff] (!%p215_p9)  ;;  %vm369_vm4 = vcmask (!%p215_p9), 1047808   ;;  %v366_v27 = vand.u32 (!%p215_p9), 127, %v365_v26  ;;  %vm348_vm6 = vcmask (!%p215_p9), 130048  }
  0x11   : > { %s1063_s16 = smov (!%p215_p9), 127   ;;  %s1064_s17 = smov (!%p215_p9), 24   ;;  %vm350_vm7 = vcmask (!%p215_p9), 195584   ;;  %vm430_vm8 = vcmask (!%p215_p9), 1043456   ;;  %v417_v0 = vld [vmem:[%s1331_s3] sm:$0x3] (!%p215_p9) }
  0x12   : > { %v367_v29 = vand.u32 (!%p215_p9), 1, %v366_v27  ;;  %s1066_s19 = smov (!%p215_p9), 120   ;;  %v418_v2 = vunpack.c.0.s8 (!%p215_p9), %v417_v0  ;;  %s1068_s9 = smov (!%p215_p9), 80  }
  0x13   : > { %s1069_s10 = smov (!%p215_p9), 112  }
  0x14   : > { %vm1214_vm5 = vcmp.eq.s32.totalorder (!%p215_p9), %v367_v29, 0  ;;  %v419_v3 = vcvt.s32.f32 (!%p215_p9), %v418_v2 }
  0x15   : > { %s244_s15 = scalar_select %p243_p10, %s1128_s25, 1 }
  0x17   : > { %875 = vmatpush3.bf16.xpose.msra.mxu0 %v286_v4  ;;  %s838_s18 = sshll.u32 %s244_s15, 3  ;;  %s1062_s15 = smov 113   ;;  %v844_v4 = vadd.f32 -1.0, %v419_v3 }
  0x18   : > { %876 = vmatprep.subr.bf16.mxu0 %v1056_v1  ;;  %s246_s26 = scalar_lea.vmem %s1328_s0, %s838_s18  ;;  %s1065_s18 = smov 97  }
  0x19   : > { %v248_v9 = vld [vmem:[%s246_s26] sm:$0xff]  ;;  %v421_v5 = vmul.f32 1e+30, %v844_v4 }
  0x1a   : > { %v249_v10 = vpack.c.bf16 %v248_v9, %v248_v9 }
  0x1f   : > { %877 = vmatpush3.bf16.xpose.msra.mxu0 %v289_v6 }
  0x20   : > { %878 = vmatprep.subr.bf16.mxu0 %v1056_v1 }
  0x27   : > { %879 = vmatpush3.bf16.xpose.msra.mxu0 %v292_v8 }
  0x28   : > { %908 = vmatprep.subr.bf16.mxu0 %v1056_v1 }
  0x2e   : > { %881 = vmatmul.mubr.msk.bf16.vlgmr.msra.gmra.mrb[0].mxu0 %vm278_vm0, %v249_v10 }
  0x2f   : > { %912 = vmatprep.mubr.msk.bf16.mxu0 %vm1057_vm1, %v1056_v1 }
 0x101   : > { %v1189_v11 = vpop.f32.mrb[0].mxu0 }
 0x102   : > { %388 = vrot.lane.b32.xlu0 %v1189_v11, %s1058_s28  ;;  %v882_v12 = vpop.f32.mrb[1].mxu0 }
 0x103   : > { %v331_v13 = vpop.f32.mrb[2].mxu0 }
 0x104   : > { %v883_v14 = vpop.f32.mrb[3].mxu0 }
 0x174   : > { %v389_v15 = vpop.permute.xlu0 %388 }
 0x175   : > { %392 = vrot.lane.b32.xlu0 %v389_v15, %s1059_s29 }
 0x179   : > { %337 = vrot.lane.b32.xlu0 %v334_v16, %s1060_s11 }
 0x1e7   : > { %v393_v17 = vpop.permute.xlu0 %392 }
 0x1e8   : > { %v394_v18 = vsel %vm391_vm2, %v393_v17, %v389_v15 }
 0x1e9   : > { %395 = vrot.lane.b32.xlu1 %v394_v18, %s1059_s29 }
 0x1eb   : > { %v338_v21 = vpop.permute.xlu0 %337 }
 0x1ec   : > { %v347_v23 = vsel %vm346_vm3, %v334_v16, %v338_v21 }
 0x1ed   : > { %370 = vrot.lane.b32.xlu1 %v1189_v11, %s1061_s12 }
 0x1f1   : > { %353 = vrot.lane.b32.xlu1 %v335_v19, %s1060_s11 }
 0x25b   : > { %v396_v20 = vpop.permute.xlu1 %395 }
 0x25c   : > { %v397_v22 = vsel %vm391_vm2, %v396_v20, %v389_v15 }
 0x25d   : > { %402 = vrot.lane.b32.xlu1 %v397_v22, %s1062_s15  ;;  %399 = vrot.lane.b32.xlu0 %v397_v22, %s1063_s16 }
 0x25f   : > { %v371_v24 = vpop.permute.xlu1 %370 }
 0x260   : > { %v372_v25 = vsel %vm369_vm4, %v371_v24, %v1189_v11 }
 0x261   : > { %373 = vrot.lane.b32.xlu0 %v372_v25, %s1061_s12  ;;  %407 = vrot.lane.b32.xlu1 %v347_v23, %s1061_s12  ;;  %v425_v25 = vpack.c.bf16 %v1189_v11, %v1189_v11 }
 0x263   : > { %v354_v28 = vpop.permute.xlu1 %353 }
 0x264   : > { %v362_v34 = vsel %vm346_vm3, %v335_v19, %v354_v28 }
 0x265   : > { %340 = vrot.lane.b32.xlu0 %v334_v16, %s1059_s29  ;;  %356 = vrot.lane.b32.xlu1 %v335_v19, %s1059_s29 }
 0x269   : > { %343 = vrot.lane.b32.xlu0 %v334_v16, %s1064_s17  ;;  %359 = vrot.lane.b32.xlu1 %v335_v19, %s1064_s17 }
 0x2cf   : > { %v400_v30 = vpop.permute.xlu0 %399  ;;  %v403_v31 = vpop.permute.xlu1 %402 }
 0x2d0   : > { %v405_v35 = vsel %vm1214_vm5, %v400_v30, %v403_v31 }
 0x2d1   : > { %v411_v37 = vmul.f32 %v405_v35, %v362_v34 }
 0x2d3   : > { %v374_v33 = vpop.permute.xlu0 %373  ;;  %v408_v38 = vpop.permute.xlu1 %407 }
 0x2d4   : > { %v375_v36 = vsel %vm369_vm4, %v374_v33, %v1189_v11  ;;  %v410_v52 = vmul.f32 %v408_v38, %v1189_v11 }
 0x2d5   : > { %380 = vrot.lane.b32.xlu1 %v375_v36, %s1065_s18  ;;  %377 = vrot.lane.b32.xlu0 %v375_v36, %s1063_s16  ;;  %s240_s16 = sand.u32 1, %s1046_s22   ;;  %s853_s18 = sshll.u32 %s1128_s25, 7 }
 0x2d6   : > { %s1071_s25 = smov [#allocation2]  }
 0x2d7   : > { %v357_v39 = vpop.permute.xlu1 %356  ;;  %v341_v40 = vpop.permute.xlu0 %340 }
 0x2d8   : > { %v349_v43 = vsel %vm348_vm6, %v347_v23, %v341_v40  ;;  %v363_v45 = vsel %vm348_vm6, %v362_v34, %v357_v39 }
 0x2d9   : > { %413 = vrot.lane.b32.xlu0 %v411_v37, %s1061_s12  ;;  %s1070_s12 = smov 72  }
 0x2db   : > { %v360_v41 = vpop.permute.xlu1 %359  ;;  %v344_v42 = vpop.permute.xlu0 %343 }
 0x2dc   : > { %v351_v44 = vsel %vm350_vm7, %v349_v43, %v344_v42  ;;  %v364_v48 = vsel %vm350_vm7, %v363_v45, %v360_v41 }
 0x2dd   : > { %v384_v50 = vmul.f32 %v351_v44, %v1189_v11 }
 0x347   : > { %v381_v46 = vpop.permute.xlu1 %380  ;;  %v378_v47 = vpop.permute.xlu0 %377 }
 0x348   : > { %v383_v49 = vsel %vm1214_vm5, %v378_v47, %v381_v46 }
 0x349   : > { %v385_v51 = vmul.f32 %v383_v49, %v364_v48 }
 0x34b   : > { %v386_v53 = vadd.f32 %v385_v51, %v384_v50  ;;  %v414_v54 = vpop.permute.xlu0 %413 }
 0x34c   : > { %v416_v55 = vadd.f32 %v414_v54, %v410_v52 }
 0x34d   : > { %v422_v56 = vmul.f32 0.35355338, %v386_v53 }
 0x34e   : > { %v424_v57 = vpack.c.bf16 %v416_v55, %v416_v55 }
 0x34f   : > { %v423_v58 = vpack.c.bf16 %v422_v56, %v422_v56 }
 0x350   : > { %435 = vrot.lane.b32.xlu1 %v424_v57, %s1058_s28  ;;  %s1067_s28 = smov 88  }
 0x351   : > { %v427_v59 = vrot.slane %v423_v58, 4 }
 0x353   : > { %428 = vrot.lane.b32.xlu0 %v427_v59, %s1066_s19 }
 0x3c2   : > { %v436_v60 = vpop.permute.xlu1 %435 }
 0x3c3   : > { %v440_v61 = vsel %vm346_vm3, %v436_v60, 0 }
 0x3c4   : > { %885 = vmatpush3.bf16.xpose.msra.mxu1 %v440_v61 }
 0x3c5   : > { %890 = vmatprep.subr.bf16.mxu1 %v1056_v1  ;;  %v429_v62 = vpop.permute.xlu0 %428 }
 0x3c6   : > { %v433_v63 = vsel %vm430_vm8, %v423_v58, %v429_v62 }
 0x3cb   : > { %887 = vmatmul.mubr.msk.bf16.vlgmr.msra.gmra.mrb[0].mxu1 %vm346_vm3, %v433_v63 }
 0x3cc   : > { %892 = vmatprep.mubr.msk.bf16.mxu1 %vm1057_vm1, %v1056_v1 }
 0x49e   : > { %v476_v6 = vpop.f32.mrb[0].mxu1 }
 0x49f   : > { %v477_v7 = vadd.f32 %v476_v6, %v421_v5  ;;  %v888_v8 = vpop.f32.mrb[1].mxu1 }
 0x4a0   : > { %v479_v9 = vpop.f32.mrb[2].mxu1 }
 0x4a1   : > { %v480_v10 = vadd.f32 %v479_v9, %v421_v5  ;;  %v889_v12 = vpop.f32.mrb[3].mxu1  ;;  %v483_v13 = vsel %vm346_vm3, %v477_v7, -inf }
 0x4a2   : > { %484 = vmax.xlane.f32.xlu1 %v483_v13 }
 0x4a3   : > { %v486_v14 = vsel %vm346_vm3, %v480_v10, -inf }
 0x4a4   : > { %487 = vmax.xlane.f32.xlu0 %v486_v14 }
 0x52f   : > { %v485_v15 = vpop.xlane.xlu1 %484 }
 0x530   : > { %v489_v16 = vsub.f32 %v477_v7, %v485_v15  ;;  %v975_v7 = vld [vmem:[%s1330_s2 + $0x8] sm:$0xff]  }
 0x531   : > { %v488_v17 = vpop.xlane.xlu0 %487  ;;  %v717_v8 = vsel %vm278_vm0, %v975_v7, 0 }
 0x532   : > { %v491_v18 = vmul.f32 1.442695, %v489_v16  ;;  %v490_v19 = vsub.f32 %v480_v10, %v488_v17 }
 0x534   : > { %976 = vpow2.f32 %v491_v18  ;;  %v493_v20 = vmul.f32 1.442695, %v490_v19 }
 0x536   : > { %978 = vpow2.f32 %v493_v20 }
 0x53e   : > { %v977_v21 = vpop.eup %976 }
 0x53f   : > { %v495_v22 = vsel %vm346_vm3, %v977_v21, 0.0 }
 0x540   : > { %v979_v23 = vpop.eup %978  ;;  %496 = vadd.xlane.f32.xlu0 %v495_v22 }
 0x541   : > { %v498_v24 = vsel %vm346_vm3, %v979_v23, 0.0 }
 0x542   : > { %499 = vadd.xlane.f32.xlu1 %v498_v24 }
 0x553   : > { %559 = vrot.lane.b32.xlu1 %v424_v57, %s1067_s28  ;;  %s1285_s28 = scalar_lea.hbm %s1334_s6, %s853_s18 }
 0x556   : > { %507 = vrot.lane.b32.xlu0 %v425_v25, %s1068_s9  ;;  %s761_s9 = scalar_lea.sflag [#allocation3], %s240_s16 }
 0x557   : > { %557 = vrot.lane.b32.xlu1 %v433_v63, %s1069_s10 }
 0x5cd   : > { %v497_v26 = vpop.xlane.xlu0 %496 }
 0x5ce   : > { %980 = vrcp.f32 %v497_v26 }
 0x5cf   : > { %v500_v27 = vpop.xlane.xlu1 %499 }
 0x5d0   : > { %982 = vrcp.f32 %v500_v27 }
 0x5d1   : > { %v508_v28 = vpop.permute.xlu0 %507 }
 0x5d2   : > { %v513_v29 = vsel %vm430_vm8, %v508_v28, 0 }
 0x5d3   : > { %891 = vmatpush3.bf16.msra.mxu1 %v513_v29  ;;  %v560_v34 = vpop.permute.xlu1 %559 }
 0x5d4   : > { %896 = vmatprep.subr.bf16.mxu1 %v1056_v1  ;;  %v565_v35 = vsel %vm346_vm3, %v560_v34, 0 }
 0x5d7   : > { %v558_v36 = vpop.permute.xlu1 %557 }
 0x5d8   : > { %v981_v30 = vpop.eup %980 }
 0x5d9   : > { %v503_v32 = vmul.f32 %v981_v30, %v977_v21 }
 0x5da   : > { %v983_v31 = vpop.eup %982 }
 0x5db   : > { %v504_v33 = vmul.f32 %v983_v31, %v979_v23 }
 0x5dd   : > { %v505_v11 = vpack.c.bf16 %v504_v33, %v503_v32 }
 0x5df   : > { %893 = vmatmul.mubr.msk.bf16.vlgmr.msra.gmra.mrb[4].mxu1 %vm346_vm3, %v505_v11 }
 0x5e0   : > { %897 = vmatpush3.bf16.xpose.msra.mxu1 %v565_v35  ;;  %898 = vmatprep.mubr.msk.bf16.mxu1 %vm1057_vm1, %v1056_v1 }
 0x5e1   : > { %902 = vmatprep.subr.bf16.mxu1 %v1056_v1 }
 0x5e7   : > { %899 = vmatmul.mubr.msk.bf16.vlgmr.msra.gmra.mrb[8].mxu1 %vm346_vm3, %v558_v36 }
 0x5e8   : > { %904 = vmatprep.mubr.msk.bf16.mxu1 %vm1057_vm1, %v1056_v1 }
 0x6b2   : > { %v549_v37 = vpop.f32.mrb[4].mxu1 }
 0x6b3   : > { %v894_v38 = vpop.f32.mrb[5].mxu1 }
 0x6b4   : > { %v552_v39 = vpop.f32.mrb[6].mxu1 }
 0x6b5   : > { %v895_v40 = vpop.f32.mrb[7].mxu1 }
 0x6ba   : > { %v601_v41 = vpop.f32.mrb[8].mxu1 }
 0x6bb   : > { %v602_v42 = vadd.f32 %v601_v41, %v421_v5  ;;  %v900_v43 = vpop.f32.mrb[9].mxu1 }
 0x6bc   : > { %v604_v44 = vpop.f32.mrb[10].mxu1 }
 0x6bd   : > { %v605_v45 = vadd.f32 %v604_v44, %v421_v5  ;;  %v901_v46 = vpop.f32.mrb[11].mxu1  ;;  %v608_v47 = vsel %vm346_vm3, %v602_v42, -inf  ;;  %v974_v5 = vld [vmem:[%s1330_s2] sm:$0xff]  }
 0x6be   : > { %609 = vmax.xlane.f32.xlu0 %v608_v47  ;;  %v714_v6 = vsel %vm278_vm0, %v974_v5, 0 }
 0x6bf   : > { %v611_v48 = vsel %vm346_vm3, %v605_v45, -inf  ;;  %909 = vmatpush3.bf16.xpose.msra.mxu0 %v714_v6 }
 0x6c0   : > { %612 = vmax.xlane.f32.xlu1 %v611_v48  ;;  %910 = vmatprep.subr.bf16.mxu0 %v1056_v1 }
 0x6c7   : > { %911 = vmatpush3.bf16.xpose.msra.mxu0 %v717_v8 }
 0x6d1   : > { %631 = vrot.lane.b32.xlu1 %v425_v25, %s1070_s12  ;;  %s996_s12 = sshll.u32 %s1071_s25, 4  ;;  %s997_s12 = int_to_ptr.vmem [resolvable:$false] %s996_s12 }
 0x6d2   : > { %s998_s13 = scalar_lea.vmem %s997_s12, 256 }
 0x74b   : > { %v610_v49 = vpop.xlane.xlu0 %609 }
 0x74c   : > { %v614_v50 = vsub.f32 %v602_v42, %v610_v49 }
 0x74d   : > { %v613_v51 = vpop.xlane.xlu1 %612 }
 0x74e   : > { %v616_v52 = vmul.f32 1.442695, %v614_v50  ;;  %v615_v53 = vsub.f32 %v605_v45, %v613_v51 }
 0x750   : > { %984 = vpow2.f32 %v616_v52  ;;  %v618_v54 = vmul.f32 1.442695, %v615_v53 }
 0x751   : > { %v632_v55 = vpop.permute.xlu1 %631 }
 0x752   : > { %986 = vpow2.f32 %v618_v54  ;;  %v637_v56 = vsel %vm430_vm8, %v632_v55, 0 }
 0x753   : > { %903 = vmatpush3.bf16.msra.mxu1 %v637_v56 }
 0x75a   : > { %v985_v57 = vpop.eup %984 }
 0x75b   : > { %v620_v58 = vsel %vm346_vm3, %v985_v57, 0.0 }
 0x75c   : > { %v987_v59 = vpop.eup %986  ;;  %621 = vadd.xlane.f32.xlu0 %v620_v58 }
 0x75d   : > { %v623_v60 = vsel %vm346_vm3, %v987_v59, 0.0 }
 0x760   : > { %624 = vadd.xlane.f32.xlu0 %v623_v60 }
 0x776   : > { %681 = vrot.lane.b32.xlu0 %v552_v39, %s1060_s11 }
 0x7e9   : > { %v622_v61 = vpop.xlane.xlu0 %621 }
 0x7ea   : > { %988 = vrcp.f32 %v622_v61 }
 0x7ed   : > { %v625_v62 = vpop.xlane.xlu0 %624 }
 0x7ee   : > { %990 = vrcp.f32 %v625_v62 }
 0x7f1   : > { %v682_v14 = vpop.permute.xlu0 %681 }
 0x7f2   : > { %v692_v1 = vsel %vm346_vm3, %v549_v37, %v682_v14 }
 0x7f4   : > { %v989_v63 = vpop.eup %988 }
 0x7f5   : > { %v628_v2 = vmul.f32 %v989_v63, %v985_v57 }
 0x7f8   : > { %v991_v0 = vpop.eup %990 }
 0x7f9   : > { %v629_v3 = vmul.f32 %v991_v0, %v987_v59 }
 0x7fb   : > { %v630_v4 = vpack.c.bf16 %v629_v3, %v628_v2 }
 0x7fd   : > { %905 = vmatmul.mubr.msk.bf16.vlgmr.msra.gmra.mrb[12].mxu1 %vm346_vm3, %v630_v4 }
 0x8d0   : > { %v673_v9 = vpop.f32.mrb[12].mxu1 }
 0x8d1   : > { %685 = vrot.lane.b32.xlu1 %v673_v9, %s1059_s29  ;;  %v906_v10 = vpop.f32.mrb[13].mxu1  ;;  %s837_s29 = sshll.u32 %s240_s16, 3 }
 0x8d2   : > { %v676_v12 = vpop.f32.mrb[14].mxu1  ;;  %s242_s19 = scalar_lea.vmem [#allocation2], %s837_s29 }
 0x8d3   : > { %v907_v13 = vpop.f32.mrb[15].mxu1  ;;  %s774_s20 = sshll.u32 %s242_s19, 4  ;;  %s1287_s20 = int_to_ptr.vmem [resolvable:$true] %s774_s20 }
 0x8d4   : > { %s992_s10 = scalar_lea.vmem %s1287_s20, 128  ;;  %p999_p0 = scmp.lt.s32.totalorder %s1287_s20, %s997_s12 }
 0x8d5   : > { %689 = vrot.lane.b32.xlu1 %v676_v12, %s1064_s17  ;;  %p993_p11 = scmp.ne.s32.totalorder %s1287_s20, %s992_s10  ;;  %p1000_p1 = scmp.lt.s32.totalorder %s998_s13, %s992_s10 }
 0x8d7   : > { %p994_p12 = pnand %p993_p11, %p1145_p5  ;;  %p1001_p2 = por %p1000_p1, %p999_p0 }
 0x8d9   : > { %p995_p13 = pneg %p994_p12 }
 0x8db   : > { %p1002_p3 = pnand %p1001_p2, %p995_p13 }
 0x943   : > { %v686_v15 = vpop.permute.xlu1 %685 }
 0x944   : > { %v693_v16 = vsel %vm348_vm6, %v692_v1, %v686_v15 }
 0x947   : > { %v690_v17 = vpop.permute.xlu1 %689 }
 0x948   : > { %v694_v18 = vsel %vm350_vm7, %v693_v16, %v690_v17 }
 0x949   : > { %v695_v19 = vpack.c.bf16 %v694_v18, %v694_v18 }
 0x94b   : > { %913 = vmatmul.mubr.msk.bf16.vlgmr.msra.gmra.mrb[4].mxu0 %vm278_vm0, %v695_v19 }
 0xa1e   : > { %v753_v20 = vpop.f32.mrb[4].mxu0 }
 0xa1f   : > { %759 = vst.msk [vmem:[%s242_s19] sm:$0xff] %vm278_vm0, %v753_v20  ;;  %v914_v21 = vpop.f32.mrb[5].mxu0 }
 0xa20   : > { %v756_v22 = vpop.f32.mrb[6].mxu0 }
 0xa21   : > { %1005 = shalt.err (!%p1002_p3)
}
 0xa22   : > { %s1006_s14 = scalar_lea.hbm %s1285_s28, 128  ;;  %s1010_s16 = scalar_lea.hbm %s1334_s6, 256 }
 0xa23   : > { %p1007_p4 = scmp.ne.s32.totalorder %s1285_s28, %s1006_s14  ;;  %p1011_p9 = scmp.lt.u32.totalorder %s1285_s28, %s1334_s6 }
 0xa24   : > { %p1012_p10 = scmp.lt.u32.totalorder %s1010_s16, %s1006_s14  ;;  %p1014_p12 = scmp.lt.u32.totalorder %s1006_s14, %s1285_s28 }
 0xa25   : > { %p1008_p7 = pnand %p1007_p4, %p1145_p5 }
 0xa26   : > { %p1013_p11 = por %p1012_p10, %p1011_p9 }
 0xa27   : > { %p1009_p8 = pneg %p1008_p7 }
 0xa28   : > { %p1015_p13 = por %p1014_p12, %p1013_p11 }
 0xa2a   : > { %p1016_p0 = pnand %p1015_p13, %p1009_p8 }
 0xa2c   : > { %1019 = shalt.err (!%p1016_p0)
}
 0xa2d   : > { %916 = dma.vmem_to_hbm [thread:$0]  (%p1145_p5), %s1287_s20, 128, %s1285_s28, %s761_s9   ;;  %v915_v23 = vpop.f32.mrb[7].mxu0 }
 0xa2e PF: > { %p922_p1 = scmp.ge.s32.totalorder %s1054_s24, 2  ;;  %s786_s19 = sand.u32 1, %s1042_s21  }
 0xa2f   : > { %s787_s26 = scalar_lea.sflag [#allocation3], %s786_s19 }
 0xa30   : > { %p919_p2 = pnand %p922_p1, %p1149_p6 }
 0xa32   : > { %1037 = dma.done.wait (!%p919_p2), %s787_s26, 128  }
 0xa33   : > { %1039 = vsyncadd (!%p919_p2), %s787_s26, 4294967168  ;;  %p16_p3 = scmp.ge.s32.totalorder %s1132_s27, 4   ;;  %s1339_s21 = smov %s1046_s22 }
 0xa34   : > { %s1340_s22 = smov %s1050_s23  ;;  %s1341_s23 = smov %s1143_s30 }
 0xa35   : > { %s1342_s24 = smov %s1132_s27  ;;  %18 = sbr.rel (!%p16_p3) target bundleno = 3 (0x3), region = 79 }
 0xa3c   :  { %792 = vsyncpa [#allocation3], 1 }
 0xa3d   :  { %794 = vsyncpa [#allocation3 + $0x1], 1 }

</bundles_post_ra>
